<compile_context>
chip_gen: v7x
topology: tpu7x:2x2x1
jax: 0.10.0
libtpu: 0.0.40
codegen_flags: <defaults>
</compile_context>

<pallas_src>
import math
from functools import partial

import jax
import jax.numpy as jnp
from jax import lax
from jax.experimental import pallas as pl
from jax.experimental.pallas import tpu as pltpu

_LN_EPS = 1e-5


def _round_up(x, m):
    return ((x + m - 1) // m) * m


def _make_kernel(q_total, c_out, c_pad, needs_halo):
    """Conv-as-one-fused-matmul + bias + LayerNorm(channels) + tanh-GELU."""
    inv_n = 1.0 / float(c_out)
    pad_extra = float(c_pad - c_out)
    c0 = math.sqrt(2.0 / math.pi)
    c1 = 0.044715

    def kernel(*refs):
        x_ref = refs[0]                       # (TM, SC)              bf16
        idx = 1
        if needs_halo:
            halo_ref = refs[idx]              # (HALO, SC)            bf16
            idx += 1
        w_ref, bgb_ref, o_ref = refs[idx:idx + 3]
        # w_ref: (q_total*SC, C_pad) bf16 ; bgb_ref: (3, C_pad) f32 [bias, gamma, beta]
        # o_ref: (TM, C_pad) bf16

        # ---- Conv1d: one deep-contraction MXU matmul (K accumulation inside MXU) ----
        if q_total == 1:
            operand = x_ref[...]
        else:
            parts = [x_ref[...]]
            for q in range(1, q_total):
                # rows shifted by q output frames; last q rows come from the halo block
                parts.append(jnp.concatenate([x_ref[q:, :], halo_ref[:q, :]], axis=0))
            operand = jnp.concatenate(parts, axis=-1)       # (TM, q_total*SC)
        y = jnp.dot(operand, w_ref[...], preferred_element_type=jnp.float32)
        y = y + bgb_ref[0:1, :]                             # (TM, C_pad) f32

        # ---- LayerNorm over true channels (padded lanes are exactly zero, so no mask) ----
        mean = jnp.sum(y, axis=-1, keepdims=True) * inv_n
        centered = y - mean
        sq = jnp.sum(centered * centered, axis=-1, keepdims=True)
        var = (sq - pad_extra * (mean * mean)) * inv_n      # biased variance over C_out
        y_n = centered * lax.rsqrt(var + _LN_EPS)
        y_n = y_n * bgb_ref[1:2, :] + bgb_ref[2:3, :]

        # ---- GELU (tanh approximation -> EUP slot; ~1e-3 from exact-erf GELU) ----
        inner = c0 * (y_n + c1 * (y_n * y_n * y_n))
        out = 0.5 * y_n * (1.0 + jnp.tanh(inner))
        o_ref[...] = out.astype(o_ref.dtype)

    return kernel


@partial(jax.jit, static_argnames=("stride", "row_tile"))
def hubert_embedding_block(x, conv_w, conv_b, ln_w, ln_b, *, stride, row_tile=None):
    """x: (B, C_in, L) f32; conv_w: (C_out, C_in, K); returns (B, C_out, L_out) in x.dtype."""
    B, C_in, L = x.shape
    C_out, _, K = conv_w.shape
    L_out = (L - K) // stride + 1

    q_total = -(-K // stride)                 # ceil(K/stride) shifted operand groups
    needs_halo = q_total > 1
    HALO = _round_up(q_total - 1, 8) if needs_halo else 0
    align = max(HALO, 8)

    SC = stride * C_in                        # fused (stride, C_in) chunk width
    C_pad = _round_up(C_out, 128)             # lane-dense output stores

    if row_tile is None:
        # ~2 MiB combined (x + out) bf16 tile to amortize per-grid-step overhead.
        budget_rows = (2 << 20) // (2 * (SC + C_pad))
        row_tile = int(min(1024, max(256, (budget_rows // 256) * 256)))

    TM = min(row_tile, _round_up(L_out, align))
    TM = _round_up(TM, align)
    num_tiles = -(-L_out // TM)
    M_pad = num_tiles * TM

    # ---- glue (layout only, no math): NCL -> stride-grouped rows, bf16 ----
    G_pad = M_pad + HALO
    L_target = G_pad * stride
    x_t = jnp.transpose(x, (0, 2, 1))                        # (B, L, C_in)
    if L < L_target:
        x_t = jnp.pad(x_t, ((0, 0), (0, L_target - L), (0, 0)))
    else:
        x_t = x_t[:, :L_target, :]
    x_g = x_t.reshape(B, G_pad, SC).astype(jnp.bfloat16)     # same bytes as x

    # weights: (C_out, C_in, K) -> fused (q_total*SC, C_pad), zero-padded taps/channels
    K_pad = q_total * stride
    w_pad = jnp.pad(conv_w, ((0, C_pad - C_out), (0, 0), (0, K_pad - K)))
    w_fused = jnp.transpose(w_pad, (2, 1, 0)).reshape(q_total * SC, C_pad)
    w_fused = w_fused.astype(jnp.bfloat16)

    # conv bias / LN gamma / LN beta packed into one (3, C_pad) f32 array -> one DMA
    bgb = jnp.stack([
        jnp.pad(conv_b, (0, C_pad - C_out)),
        jnp.pad(ln_w, (0, C_pad - C_out)),
        jnp.pad(ln_b, (0, C_pad - C_out)),
    ]).astype(jnp.float32)

    grid = (B, num_tiles)
    halo_blocks = TM // HALO if needs_halo else 0

    in_specs = [pl.BlockSpec((None, TM, SC), lambda b, i: (b, i, 0))]
    inputs = [x_g]
    if needs_halo:
        in_specs.append(
            pl.BlockSpec((None, HALO, SC),
                         lambda b, i: (b, (i + 1) * halo_blocks, 0)))
        inputs.append(x_g)                    # same array, tiny halo window
    in_specs += [
        pl.BlockSpec((q_total * SC, C_pad), lambda b, i: (0, 0)),
        pl.BlockSpec((3, C_pad), lambda b, i: (0, 0)),
    ]
    inputs += [w_fused, bgb]

    out = pl.pallas_call(
        _make_kernel(q_total, C_out, C_pad, needs_halo),
        out_shape=jax.ShapeDtypeStruct((B, M_pad, C_pad), jnp.bfloat16),
        grid=grid,
        in_specs=in_specs,
        out_specs=pl.BlockSpec((None, TM, C_pad), lambda b, i: (b, i, 0)),
        compiler_params=pltpu.CompilerParams(
            dimension_semantics=("parallel", "parallel"),
            vmem_limit_bytes=32 * 1024 * 1024,
        ),
    )(*inputs)

    # ---- glue: drop padded frames / channels, back to PyTorch NCL layout ----
    # (in a conv stack, keep (B, L, C) bf16 and feed the next layer directly)
    out = out[:, :L_out, :C_out]                             # (B, L_out, C_out) bf16
    return jnp.transpose(out, (0, 2, 1)).astype(x.dtype)     # (B, C_out, L_out)


def _reference(x, conv_w, conv_b, ln_w, ln_b, stride):
    """Pure-JAX f32 reference mirroring the PyTorch forward (exact-erf GELU)."""
    B, C_in, L = x.shape
    C_out, _, K = conv_w.shape
    L_out = (L - K) // stride + 1
    idx = (jnp.arange(L_out) * stride)[:, None] + jnp.arange(K)[None, :]
    patches = jnp.transpose(x[:, :, idx], (0, 2, 1, 3)).reshape(B * L_out, C_in * K)
    y = patches @ conv_w.reshape(C_out, -1).T + conv_b[None, :]
    mean = y.mean(-1, keepdims=True)
    var = ((y - mean) ** 2).mean(-1, keepdims=True)
    y = (y - mean) / jnp.sqrt(var + _LN_EPS) * ln_w[None, :] + ln_b[None, :]
    y = 0.5 * y * (1.0 + lax.erf(y / math.sqrt(2.0)))
    return jnp.transpose(y.reshape(B, L_out, C_out), (0, 2, 1))


def _run_case(key, B, C_in, L, C_out, K, stride):
    k_x, k_w, k_b, k_g, k_beta = jax.random.split(key, 5)
    x = jax.random.normal(k_x, (B, C_in, L), dtype=jnp.float32)
    fan_in = C_in * K
    bound = 1.0 / math.sqrt(fan_in)
    conv_w = jax.random.uniform(k_w, (C_out, C_in, K), jnp.float32, -bound, bound)
    conv_b = jax.random.uniform(k_b, (C_out,), jnp.float32, -bound, bound)
    ln_w = jnp.ones((C_out,), jnp.float32) + 0.01 * jax.random.normal(k_g, (C_out,))
    ln_b = 0.01 * jax.random.normal(k_beta, (C_out,))

    out = hubert_embedding_block(x, conv_w, conv_b, ln_w, ln_b, stride=stride)
    out = jax.block_until_ready(out)

    ref = _reference(x, conv_w, conv_b, ln_w, ln_b, stride)
    L_out = (L - K) // stride + 1
    assert out.shape == (B, C_out, L_out), out.shape
    # bf16 matmul inputs/outputs + tanh-GELU vs. f32 exact-erf reference -> relaxed tol
    max_err = float(jnp.max(jnp.abs(out - ref)))
    assert jnp.allclose(out, ref, rtol=4e-2, atol=4e-2), f"mismatch, max_err={max_err}"


if __name__ == "__main__":
    key = jax.random.PRNGKey(0)
    k1, k2 = jax.random.split(key)
    # Small shapes consistent with the module: Conv1d(in=4, out=32, k=3, stride=2)
    _run_case(k1, B=2, C_in=4, L=16, C_out=32, K=3, stride=2)   # K > stride (halo path)
    _run_case(k2, B=2, C_in=4, L=16, C_out=32, K=2, stride=2)   # K == stride (no halo)
    print("KERNEL_OK")
</pallas_src>

<mosaic_0001>
module attributes {stable_mosaic.version = 11 : i64} {
  func.func @kernel(%arg0: i32, %arg1: i32, %arg2: memref<1x8x8xbf16, #tpu.memory_space<vmem>>, %arg3: memref<1x8x8xbf16, #tpu.memory_space<vmem>>, %arg4: memref<16x128xbf16, #tpu.memory_space<vmem>>, %arg5: memref<3x128xf32, #tpu.memory_space<vmem>>, %arg6: memref<1x8x128xbf16, #tpu.memory_space<vmem>>) attributes {dimension_semantics = [#tpu.dimension_semantics<parallel>, #tpu.dimension_semantics<parallel>], iteration_bounds = array<i64: 2, 1>, scalar_prefetch = 0 : i64, scratch_operands = 0 : i64, tpu.core_type = #tpu.core_type<tc>, window_params = [{transform_indices = @transform_0, window_bounds = array<i64: 1, 8, 8>}, {transform_indices = @transform_1, window_bounds = array<i64: 1, 8, 8>}, {pipeline_mode = #tpu.pipeline_mode<synchronous>, transform_indices = @transform_2, window_bounds = array<i64: 16, 128>}, {pipeline_mode = #tpu.pipeline_mode<synchronous>, transform_indices = @transform_3, window_bounds = array<i64: 3, 128>}, {transform_indices = @transform_4, window_bounds = array<i64: 1, 8, 128>}]} {
    %c0 = arith.constant 0 : index
    %c0_0 = arith.constant 0 : index
    %c0_1 = arith.constant 0 : index
    %0 = vector.load %arg2[%c0, %c0_0, %c0_1] : memref<1x8x8xbf16, #tpu.memory_space<vmem>>, vector<1x8x8xbf16>
    %1 = vector.shape_cast %0 : vector<1x8x8xbf16> to vector<8x8xbf16>
    %c0_2 = arith.constant 0 : index
    %c1 = arith.constant 1 : index
    %c0_3 = arith.constant 0 : index
    %2 = vector.load %arg2[%c0_2, %c1, %c0_3] : memref<1x8x8xbf16, #tpu.memory_space<vmem>>, vector<1x7x8xbf16>
    %3 = vector.shape_cast %2 : vector<1x7x8xbf16> to vector<7x8xbf16>
    %c0_4 = arith.constant 0 : index
    %c0_5 = arith.constant 0 : index
    %c0_6 = arith.constant 0 : index
    %4 = vector.load %arg3[%c0_4, %c0_5, %c0_6] : memref<1x8x8xbf16, #tpu.memory_space<vmem>>, vector<1x1x8xbf16>
    %5 = vector.shape_cast %4 : vector<1x1x8xbf16> to vector<1x8xbf16>
    %6 = tpu.concatenate %3, %5 in 0 : vector<7x8xbf16>, vector<1x8xbf16> -> vector<8x8xbf16>
    %7 = tpu.concatenate %1, %6 in 1 : vector<8x8xbf16>, vector<8x8xbf16> -> vector<8x16xbf16>
    %c0_7 = arith.constant 0 : index
    %c0_8 = arith.constant 0 : index
    %8 = vector.load %arg4[%c0_7, %c0_8] : memref<16x128xbf16, #tpu.memory_space<vmem>>, vector<16x128xbf16>
    %cst = arith.constant dense<0.000000e+00> : vector<8x128xf32>
    %9 = tpu.matmul %7, %8, %cst {dimension_numbers = #tpu.dot_dimension_numbers<[1], [0], [0], [1], [0, 0, 1, 1], [], []>} : vector<8x16xbf16>, vector<16x128xbf16>, vector<8x128xf32> -> vector<8x128xf32>
    %c0_9 = arith.constant 0 : index
    %c0_10 = arith.constant 0 : index
    %10 = vector.load %arg5[%c0_9, %c0_10] : memref<3x128xf32, #tpu.memory_space<vmem>>, vector<1x128xf32>
    %11 = vector.broadcast %10 : vector<1x128xf32> to vector<8x128xf32>
    %12 = arith.addf %9, %11 : vector<8x128xf32>
    %cst_11 = arith.constant dense<0.000000e+00> : vector<8xf32>
    %13 = vector.multi_reduction <add>, %12, %cst_11 [1] : vector<8x128xf32> to vector<8xf32>
    %14 = vector.shape_cast %13 : vector<8xf32> to vector<8x1xf32>
    %cst_12 = arith.constant 3.125000e-02 : f32
    %15 = vector.broadcast %cst_12 : f32 to vector<8x1xf32>
    %16 = arith.mulf %14, %15 : vector<8x1xf32>
    %17 = vector.broadcast %16 : vector<8x1xf32> to vector<8x128xf32>
    %18 = arith.subf %12, %17 : vector<8x128xf32>
    %19 = arith.mulf %18, %18 : vector<8x128xf32>
    %cst_13 = arith.constant dense<0.000000e+00> : vector<8xf32>
    %20 = vector.multi_reduction <add>, %19, %cst_13 [1] : vector<8x128xf32> to vector<8xf32>
    %21 = vector.shape_cast %20 : vector<8xf32> to vector<8x1xf32>
    %22 = arith.mulf %16, %16 : vector<8x1xf32>
    %cst_14 = arith.constant 9.600000e+01 : f32
    %23 = vector.broadcast %cst_14 : f32 to vector<8x1xf32>
    %24 = arith.mulf %23, %22 : vector<8x1xf32>
    %25 = arith.subf %21, %24 : vector<8x1xf32>
    %cst_15 = arith.constant 3.125000e-02 : f32
    %26 = vector.broadcast %cst_15 : f32 to vector<8x1xf32>
    %27 = arith.mulf %25, %26 : vector<8x1xf32>
    %cst_16 = arith.constant 9.99999974E-6 : f32
    %28 = vector.broadcast %cst_16 : f32 to vector<8x1xf32>
    %29 = arith.addf %27, %28 : vector<8x1xf32>
    %30 = math.rsqrt %29 : vector<8x1xf32>
    %31 = vector.broadcast %30 : vector<8x1xf32> to vector<8x128xf32>
    %32 = arith.mulf %18, %31 : vector<8x128xf32>
    %c1_17 = arith.constant 1 : index
    %c0_18 = arith.constant 0 : index
    %33 = vector.load %arg5[%c1_17, %c0_18] : memref<3x128xf32, #tpu.memory_space<vmem>>, vector<1x128xf32>
    %34 = vector.broadcast %33 : vector<1x128xf32> to vector<8x128xf32>
    %35 = arith.mulf %32, %34 : vector<8x128xf32>
    %c2 = arith.constant 2 : index
    %c0_19 = arith.constant 0 : index
    %36 = vector.load %arg5[%c2, %c0_19] : memref<3x128xf32, #tpu.memory_space<vmem>>, vector<1x128xf32>
    %37 = vector.broadcast %36 : vector<1x128xf32> to vector<8x128xf32>
    %38 = arith.addf %35, %37 : vector<8x128xf32>
    %39 = arith.mulf %38, %38 : vector<8x128xf32>
    %40 = arith.mulf %39, %38 : vector<8x128xf32>
    %cst_20 = arith.constant 4.471500e-02 : f32
    %41 = vector.broadcast %cst_20 : f32 to vector<8x128xf32>
    %42 = arith.mulf %41, %40 : vector<8x128xf32>
    %43 = arith.addf %38, %42 : vector<8x128xf32>
    %cst_21 = arith.constant 0.797884583 : f32
    %44 = vector.broadcast %cst_21 : f32 to vector<8x128xf32>
    %45 = arith.mulf %44, %43 : vector<8x128xf32>
    %cst_22 = arith.constant 5.000000e-01 : f32
    %46 = vector.broadcast %cst_22 : f32 to vector<8x128xf32>
    %47 = arith.mulf %46, %38 : vector<8x128xf32>
    %48 = math.tanh %45 : vector<8x128xf32>
    %cst_23 = arith.constant 1.000000e+00 : f32
    %49 = vector.broadcast %cst_23 : f32 to vector<8x128xf32>
    %50 = arith.addf %49, %48 : vector<8x128xf32>
    %51 = arith.mulf %47, %50 : vector<8x128xf32>
    %52 = arith.truncf %51 : vector<8x128xf32> to vector<8x128xbf16>
    %c0_24 = arith.constant 0 : index
    %c0_25 = arith.constant 0 : index
    %c0_26 = arith.constant 0 : index
    %53 = vector.load %arg6[%c0_24, %c0_25, %c0_26] : memref<1x8x128xbf16, #tpu.memory_space<vmem>>, vector<1x8x128xbf16>
    %54 = vector.shape_cast %53 : vector<1x8x128xbf16> to vector<8x128xbf16>
    %55 = vector.shape_cast %52 : vector<8x128xbf16> to vector<1x8x128xbf16>
    tpu.vector_store %arg6[%c0_24, %c0_25, %c0_26], %55 {strides = array<i32>} : memref<1x8x128xbf16, #tpu.memory_space<vmem>>, vector<1x8x128xbf16>,
    return
  }
  func.func @transform_0(%arg0: i32, %arg1: i32) -> (i32, i32, i32) {
    %c0_i32 = arith.constant 0 : i32
    %c0_i32_0 = arith.constant 0 : i32
    return %arg0, %arg1, %c0_i32 : i32, i32, i32
  }
  func.func @transform_1(%arg0: i32, %arg1: i32) -> (i32, i32, i32) {
    %c1_i32 = arith.constant 1 : i32
    %0 = arith.addi %arg1, %c1_i32 : i32
    %c1_i32_0 = arith.constant 1 : i32
    %1 = arith.muli %0, %c1_i32_0 : i32
    %c0_i32 = arith.constant 0 : i32
    %c0_i32_1 = arith.constant 0 : i32
    return %arg0, %1, %c0_i32 : i32, i32, i32
  }
  func.func @transform_2(%arg0: i32, %arg1: i32) -> (i32, i32) {
    %c0_i32 = arith.constant 0 : i32
    %c0_i32_0 = arith.constant 0 : i32
    %c0_i32_1 = arith.constant 0 : i32
    return %c0_i32, %c0_i32_0 : i32, i32
  }
  func.func @transform_3(%arg0: i32, %arg1: i32) -> (i32, i32) {
    %c0_i32 = arith.constant 0 : i32
    %c0_i32_0 = arith.constant 0 : i32
    %c0_i32_1 = arith.constant 0 : i32
    return %c0_i32, %c0_i32_0 : i32, i32
  }
  func.func @transform_4(%arg0: i32, %arg1: i32) -> (i32, i32, i32) {
    %c0_i32 = arith.constant 0 : i32
    %c0_i32_0 = arith.constant 0 : i32
    return %arg0, %arg1, %c0_i32 : i32, i32, i32
  }
}

</mosaic_0001>

<bundles_post_ra>
// kernel: hubert_embedding_block.1
= control target key start
LH: loop header
LB: loop body
LE: loop exit
PB: predicated region body
PF: predicated region fallthrough
CT: control target
= control target key end

     0   :  { %s603_s15 = smov 0   ;;  %s605_s16 = smov 0   ;;  %s655_s0 = inlined_call_operand.vmem [shape: bf16[2,16,8], index: 0, kind: input, shape index: {}, may-alias: {0,1}]   ;;  %s656_s1 = inlined_call_operand.vmem [shape: bf16[2,16,8], index: 1, kind: input, shape index: {}, may-alias: {0,1}]   ;;  %s657_s2 = inlined_call_operand.vmem [shape: bf16[16,128], index: 2, kind: input, shape index: {}]   ;;  %s658_s3 = inlined_call_operand.vmem [shape: f32[3,128], index: 3, kind: input, shape index: {}]   ;;  %s659_s4 = inlined_call_operand.vmem [shape: bf16[2,8,128], index: 4, kind: output, shape index: {}]  }
   0x1   :  { %s607_s17 = smov 0  }
   0x2 LB: > { %s26_s18 = sadd.s32 1, %s569_s16  ;;  %p490_p0 = scmp.ge.s32.totalorder %s573_s17, 1  ;;  %s573_s17 = sphi %s607_s17, %s14_s17   ;;  %s569_s16 = sphi %s605_s16, %s661_s16   ;;  %s565_s15 = sphi %s603_s15, %s660_s15  }
   0x3   : > { %p28_p1 = scmp.ge.s32.totalorder %s26_s18, 2  ;;  %p200_p2 = scmp.lt.s32.totalorder %s573_s17, 3 }
   0x5   : > { %s663_s18 = smov (%p28_p1, %s26_s18), 0  ;;  %p201_p3 = pnand %p490_p0, %p200_p2 }
   0x6   : > { %p240_p4 = scmp.lt.s32.totalorder (!%p201_p3), %s565_s15, 1  ;;  %v575_v0 = vmov (!%p201_p3), 0.0   ;;  %v546_v1 = vld [vmem:[%s657_s2] sm:$0xff] (!%p201_p3)   ;;  %vm576_vm0 = vmmov (!%p201_p3), 0   ;;  %vm287_vm1 = vcmask (!%p201_p3), 1043456   ;;  %s577_s29 = smov (!%p201_p3), 8  }
   0x7   : > { %204 = sbr.rel (%p201_p3) target bundleno = 698 (0x2ba), region = 36  ;;  %511 = vmatprep.subr.bf16.mxu0 (!%p201_p3), %v575_v0  ;;  %513 = vmatprep.mubr.msk.bf16.mxu0 (!%p201_p3), %vm576_vm0, %v575_v0  ;;  %vm288_vm2 = vsmask.f32 (!%p201_p3), 3328  ;;  %vm294_vm4 = vcmask (!%p201_p3), 64512   ;;  %vm311_vm5 = vcmask (!%p201_p3), 130048  }
   0x8   : > { %512 = vmatpush3.bf16.msra.mxu0 (!%p201_p3), %v546_v1  ;;  %vm289_vm3 = vmand (!%p201_p3), %vm287_vm1, %vm288_vm2  ;;  %v498_v14 = vld [vmem:[%s658_s3] ss:$0 sm:$0xff] (!%p201_p3)  ;;  %v501_v31 = vld [vmem:[%s658_s3 + $0x1] ss:$0 sm:$0xff] (!%p201_p3) }
   0x9   : > { %v502_v33 = vld [vmem:[%s658_s3 + $0x2] ss:$0 sm:$0xff] (!%p201_p3) }
   0xe   : > { %s665_s15 = smov (!%p240_p4, %s565_s15), 1 }
   0xf   : > { %s505_s21 = sshll.u32 %s665_s15, 3  ;;  %s495_s10 = sshll.u32 %s665_s15, 2 }
  0x10   : > { %s247_s24 = scalar_lea.vmem %s655_s0, %s505_s21  ;;  %s507_s25 = sadd.s32 4, %s505_s21 }
  0x11   : > { %s256_s28 = scalar_lea.vmem %s656_s1, %s507_s25  ;;  %v266_v2 = vld [vmem:[%s247_s24] sm:$0xf]  ;;  %s264_s13 = scalar_lea.vmem %s659_s4, %s495_s10 }
  0x12   : > { %v496_v3 = vcombine.low %v266_v2, %v266_v2  ;;  %v545_v4 = vld [vmem:[%s256_s28] ss:$0 sps:$4 sm:$0x11]  }
  0x13   : > { %v283_v7 = vshll.u32 %v545_v4, 16 }
  0x14   : > { %v272_v5 = vshrl.u32 %v496_v3, 16  ;;  %v274_v6 = vshll.u32 %v496_v3, 16 }
  0x15   : > { %v285_v9 = vrot.slane %v283_v7, 5 }
  0x16   : > { %v276_v8 = vrot.slane %v274_v6, 1 }
  0x18   : > { %v277_v10 = vor.u32 %v276_v8, %v272_v5 }
  0x1a   : > { %v290_v11 = vsel %vm289_vm3, %v277_v10, %v285_v9 }
  0x1b   : > { %292 = vrot.lane.b32.xlu0 %v290_v11, %s577_s29 }
  0x8d   : > { %v293_v12 = vpop.permute.xlu0 %292 }
  0x8e   : > { %v297_v13 = vsel %vm294_vm4, %v266_v2, %v293_v12 }
  0x8f   : > { %514 = vmatmul.mubr.msk.bf16.vlgmr.msra.gmra.mrb[0].mxu0 %vm311_vm5, %v297_v13 }
 0x162   : > { %v348_v15 = vpop.f32.mrb[0].mxu0 }
 0x163   : > { %v349_v16 = vadd.f32 %v498_v14, %v348_v15  ;;  %v515_v17 = vpop.f32.mrb[1].mxu0 }
 0x164   : > { %v351_v18 = vpop.f32.mrb[2].mxu0 }
 0x165   : > { %354 = vadd.xlane.f32.xlu0 %v349_v16  ;;  %v516_v19 = vpop.f32.mrb[3].mxu0 }
 0x1f2   : > { %v355_v20 = vpop.xlane.xlu0 %354 }
 0x1f3   : > { %v356_v21 = vmul.f32 0.03125, %v355_v20 }
 0x1f5   : > { %v357_v22 = vsub.f32 %v349_v16, %v356_v21  ;;  %v361_v24 = vmul.f32 %v356_v21, %v356_v21 }
 0x1f7   : > { %v358_v23 = vmul.f32 %v357_v22, %v357_v22  ;;  %v362_v25 = vmul.f32 96.0, %v361_v24 }
 0x1f9   : > { %359 = vadd.xlane.f32.xlu1 %v358_v23 }
 0x286   : > { %v360_v26 = vpop.xlane.xlu1 %359 }
 0x287   : > { %v363_v27 = vsub.f32 %v360_v26, %v362_v25 }
 0x289   : > { %v364_v28 = vmul.f32 0.03125, %v363_v27 }
 0x28b   : > { %v365_v29 = vadd.f32 1e-05, %v364_v28 }
 0x28d   : > { %547 = vrsqrt.f32 %v365_v29 }
 0x297   : > { %v548_v30 = vpop.eup %547 }
 0x298   : > { %v367_v32 = vmul.f32 %v548_v30, %v357_v22 }
 0x29a   : > { %v373_v34 = vmul.f32 %v501_v31, %v367_v32 }
 0x29c   : > { %v379_v35 = vadd.f32 %v502_v33, %v373_v34 }
 0x29e   : > { %v380_v36 = vmul.f32 %v379_v35, %v379_v35  ;;  %v385_v42 = vmul.f32 0.5, %v379_v35 }
 0x2a0   : > { %v381_v37 = vmul.f32 %v380_v36, %v379_v35 }
 0x2a2   : > { %v382_v38 = vmul.f32 0.044715, %v381_v37 }
 0x2a4   : > { %v383_v39 = vadd.f32 %v382_v38, %v379_v35 }
 0x2a6   : > { %v384_v40 = vmul.f32 0.7978846, %v383_v39 }
 0x2a8   : > { %549 = vtanh.f32 %v384_v40 }
 0x2b2   : > { %v550_v41 = vpop.eup %549 }
 0x2b3   : > { %v387_v43 = vadd.f32 1.0, %v550_v41 }
 0x2b5   : > { %v388_v44 = vmul.f32 %v387_v43, %v385_v42 }
 0x2b7   : > { %v389_v45 = vpack.c.bf16 %v388_v44, %v388_v44 }
 0x2b9   : > { %390 = vst [vmem:[%s264_s13] sm:$0xf] %v389_v45 }
 0x2ba PF: > { %s14_s17 = sadd.s32 1, %s573_s17   ;;  %s660_s15 = smov %s569_s16 }
 0x2bb   : > { %p11_p5 = scmp.ge.s32.totalorder %s14_s17, 4   ;;  %s661_s16 = smov %s663_s18 }
 0x2bd   :  { %13 = sbr.rel (!%p11_p5) target bundleno = 2 (0x2), region = 69 }

</bundles_post_ra>
